<compile_context>
chip_gen: v7x
topology: tpu7x:2x2x1
jax: 0.10.0
libtpu: 0.0.40
codegen_flags: <defaults>
</compile_context>

<pallas_src>
import jax
import jax.numpy as jnp
from jax.experimental import pallas as pl
from jax.experimental.pallas import tpu as pltpu

_LANES = 128                    # vreg lane width
_TARGET_BLOCK_BYTES = 1 << 20   # ~1 MiB per block; in+out double-buffered -> ~4 MiB VMEM
_VMEM_LIMIT_BYTES = 32 << 20    # explicit scoped-VMEM limit, safe on every generation


def _identity_kernel(x_ref, o_ref):
    # Full-vreg, unmasked pass-through of one lane-dense tile.
    o_ref[...] = x_ref[...]


def _sublanes_for(dtype) -> int:
    # Packed sublane tile height: f32 -> 8, bf16/f16 -> 16, int8/fp8 -> 32.
    return 8 * (4 // jnp.dtype(dtype).itemsize)


@jax.jit
def vit_forward(x: jax.Array) -> jax.Array:
    """Pallas stand-in for Vit.forward (reference forward is a no-op)."""
    orig_shape = x.shape
    n = x.size  # static under jit
    itemsize = jnp.dtype(x.dtype).itemsize
    sublanes = _sublanes_for(x.dtype)

    # Lane-dense 2-D view: rows x 128 lanes (no sublane padding needed —
    # the (8,128) constraint applies to the block shape, and a ragged last
    # block is handled by Pallas).
    rows = pl.cdiv(n, _LANES)
    n_slab = rows * _LANES

    # ~1 MiB blocks, rows aligned to the strictest sublane multiple (32) so
    # every store is unmasked for any dtype.  When the whole slab is smaller
    # than one block, the block equals the full array dims (always legal).
    max_block_rows = max(sublanes,
                         (_TARGET_BLOCK_BYTES // (_LANES * itemsize)) // 32 * 32)
    block_rows = min(max_block_rows, rows)

    flat = x.reshape(-1)
    padded = n_slab != n  # static decision
    if padded:
        # Rare path (n % 128 != 0): one pad copy is unavoidable for a
        # lane-dense layout.
        flat = jnp.pad(flat, (0, n_slab - n))
    slab = flat.reshape(rows, _LANES)  # free bitcast on the no-pad path

    grid = (pl.cdiv(rows, block_rows),)
    out = pl.pallas_call(
        _identity_kernel,
        out_shape=jax.ShapeDtypeStruct(slab.shape, slab.dtype),
        grid=grid,
        in_specs=[pl.BlockSpec((block_rows, _LANES), lambda i: (i, 0))],
        out_specs=pl.BlockSpec((block_rows, _LANES), lambda i: (i, 0)),
        # Alias only when the slab is a dead intermediate (padded path);
        # aliasing a bitcast of a non-donated jit parameter would make XLA
        # insert a hidden defensive copy on the common path.
        input_output_aliases=({0: 0} if padded else {}),
        compiler_params=pltpu.CompilerParams(
            dimension_semantics=("parallel",),
            vmem_limit_bytes=_VMEM_LIMIT_BYTES),
    )(slab)

    if padded:
        return out.reshape(-1)[:n].reshape(orig_shape)
    return out.reshape(orig_shape)  # free bitcast


if __name__ == "__main__":
    key = jax.random.PRNGKey(0)
    # Small NCHW input consistent with a ViT-style module: batch=2, channels=4,
    # spatial 16x16  (2*4*16*16 = 2048 = 16 rows x 128 lanes, no padding needed).
    x = jax.random.normal(key, (2, 4, 16, 16), dtype=jnp.float32)

    y = vit_forward(x)
    jax.block_until_ready(y)

    # Sanity check: kernel is an exact pass-through.
    assert y.shape == x.shape and y.dtype == x.dtype
    assert bool(jnp.all(y == x))

    print("KERNEL_OK")
</pallas_src>

<mosaic_0001>
module attributes {stable_mosaic.version = 11 : i64} {
  func.func @_identity_kernel(%arg0: i32, %arg1: memref<16x128xf32, #tpu.memory_space<vmem>>, %arg2: memref<16x128xf32, #tpu.memory_space<vmem>>) attributes {dimension_semantics = [#tpu.dimension_semantics<parallel>], iteration_bounds = array<i64: 1>, scalar_prefetch = 0 : i64, scratch_operands = 0 : i64, tpu.core_type = #tpu.core_type<tc>, window_params = [{transform_indices = @transform_0, window_bounds = array<i64: 16, 128>}, {transform_indices = @transform_1, window_bounds = array<i64: 16, 128>}]} {
    %c0 = arith.constant 0 : index
    %c0_0 = arith.constant 0 : index
    %0 = vector.load %arg1[%c0, %c0_0] : memref<16x128xf32, #tpu.memory_space<vmem>>, vector<16x128xf32>
    %c0_1 = arith.constant 0 : index
    %c0_2 = arith.constant 0 : index
    %1 = vector.load %arg2[%c0_1, %c0_2] : memref<16x128xf32, #tpu.memory_space<vmem>>, vector<16x128xf32>
    tpu.vector_store %arg2[%c0_1, %c0_2], %0 {strides = array<i32>} : memref<16x128xf32, #tpu.memory_space<vmem>>, vector<16x128xf32>,
    return
  }
  func.func @transform_0(%arg0: i32) -> (i32, i32) {
    %c0_i32 = arith.constant 0 : i32
    %c0_i32_0 = arith.constant 0 : i32
    return %arg0, %c0_i32 : i32, i32
  }
  func.func @transform_1(%arg0: i32) -> (i32, i32) {
    %c0_i32 = arith.constant 0 : i32
    %c0_i32_0 = arith.constant 0 : i32
    return %arg0, %c0_i32 : i32, i32
  }
}

</mosaic_0001>

<bundles_post_ra>
// kernel: vit_forward.1
= control target key start
LH: loop header
LB: loop body
LE: loop exit
PB: predicated region body
PF: predicated region fallthrough
CT: control target
= control target key end

     0   :  { %s38_s0 = inlined_call_operand.vmem [shape: f32[16,128], index: 0, kind: input, shape index: {}]   ;;  %s39_s1 = inlined_call_operand.vmem [shape: f32[16,128], index: 1, kind: output, shape index: {}]  }
   0x1   :  { %v8_v0 = vld [vmem:[%s38_s0] sm:$0xff]  ;;  %v9_v1 = vld [vmem:[%s38_s0 + $0x8] sm:$0xff] }
   0x2   :  { %10 = vst [vmem:[%s39_s1] sm:$0xff] %v8_v0  ;;  %11 = vst [vmem:[%s39_s1 + $0x8] sm:$0xff] %v9_v1 }

</bundles_post_ra>
